<compile_context>
chip_gen: v7x
topology: tpu7x:2x2x1
jax: 0.10.0
libtpu: 0.0.40
codegen_flags: <defaults>
</compile_context>

<pallas_src>
import jax
import jax.numpy as jnp
from jax.experimental import pallas as pl
from jax.experimental.pallas import tpu as pltpu

_MiB = 1024 * 1024
_BLOCK_BYTE_BUDGET = 4 * _MiB   # per-block target: inside the 1-8 MiB sweet spot
                                # for v5e/v6e/v7x (>=85% of HBM roofline measured)
_VMEM_LIMIT_BYTES = 32 * _MiB   # 2x double-buffered (in + out) 4 MiB blocks + headroom;
                                # safe on v5e/v6e (128 MiB) and v7x (64 MiB physical)


def _relu_times4_kernel(x_ref, o_ref):
    x = x_ref[...]
    # 4 * relu(x): one VPU max + one VPU mul per element.
    o_ref[...] = jnp.maximum(x, jnp.zeros_like(x)) * 4


def _round_down(v, m):
    return (v // m) * m


def _round_up(v, m):
    return -(-v // m) * m


def _lane_dense_view(x):
    """Return a 2-D view of x, preferably with a last dim that is a multiple
    of 128 (lane-dense -> unmasked vector stores)."""
    if x.ndim != 2:
        x = x.reshape(-1, x.shape[-1]) if x.ndim > 2 else x.reshape(1, -1)
    rows, cols = x.shape
    if cols % 128 != 0:
        n = rows * cols
        for lane in (4096, 2048, 1024, 512, 256, 128):
            if n % lane == 0:
                return x.reshape(n // lane, lane)
        # No lane-dense factorization; Pallas masks the ragged last dim.
    return x


def _pick_blocks(rows, cols, itemsize):
    """Byte-budgeted block shape: ~_BLOCK_BYTE_BUDGET per block, sublane axis
    a dtype-aware multiple, lane axis whole (or a large multiple of 128)."""
    sub = max(8, 32 // itemsize)                       # 8 f32, 16 bf16, 32 i8/fp8
    budget_elems = max(_BLOCK_BYTE_BUDGET // itemsize, sub * 128)

    # Column block: keep the full width when a `sub`-row stripe fits the
    # budget, otherwise tile cols in large multiples of 128 lanes.
    if cols <= 128 or cols * sub <= budget_elems:
        block_cols = cols
    else:
        block_cols = max(_round_down(budget_elems // sub, 128), 128)

    # Row block: as many rows as the byte budget allows, multiple of `sub`.
    rows_fit = max(budget_elems // max(block_cols, 1), sub)
    block_rows = max(_round_down(rows_fit, sub), sub)
    if block_rows >= rows:
        block_rows = rows

    # Don't let the grid collapse to a single step when the rows can be split:
    # with dimension_semantics="parallel" this lets v7x's two TensorCores
    # each take half of this purely memory-bound stream.
    if block_rows == rows and block_cols == cols and rows >= 2 * sub:
        half = _round_up(-(-rows // 2), sub)
        if half < rows:
            block_rows = half

    return block_rows, block_cols


def model_forward(x1, x2):
    # x1 is unused by the original module's forward pass.
    del x1
    orig_shape = x2.shape

    x = _lane_dense_view(x2)
    rows, cols = x.shape
    itemsize = jnp.dtype(x.dtype).itemsize
    block_rows, block_cols = _pick_blocks(rows, cols, itemsize)
    grid = (pl.cdiv(rows, block_rows), pl.cdiv(cols, block_cols))

    n = rows * cols
    cost = pl.CostEstimate(flops=2 * n, transcendentals=0,
                           bytes_accessed=2 * n * itemsize)

    out = pl.pallas_call(
        _relu_times4_kernel,
        out_shape=jax.ShapeDtypeStruct((rows, cols), x.dtype),
        grid=grid,
        in_specs=[pl.BlockSpec((block_rows, block_cols), lambda i, j: (i, j))],
        out_specs=pl.BlockSpec((block_rows, block_cols), lambda i, j: (i, j)),
        compiler_params=pltpu.CompilerParams(
            dimension_semantics=("parallel", "parallel"),
            vmem_limit_bytes=_VMEM_LIMIT_BYTES,
        ),
        cost_estimate=cost,
        # Same shape/dtype; honored as an in-place update when the caller
        # donates x2, otherwise XLA inserts a (safe) copy.
        input_output_aliases={0: 0},
    )(x)

    return out.reshape(orig_shape)


if __name__ == "__main__":
    key = jax.random.PRNGKey(0)
    k1, k2 = jax.random.split(key)
    # Shapes consistent with the module: x2 = (1, 256); x1 is unused.
    x1 = jax.random.normal(k1, (1, 256), dtype=jnp.float32)
    x2 = jax.random.normal(k2, (1, 256), dtype=jnp.float32)

    # Reference computed before the (aliased) call.
    ref = 4.0 * jnp.maximum(x2, 0.0)

    out = jax.block_until_ready(model_forward(x1, x2))

    assert out.shape == (1, 256)
    assert out.dtype == x2.dtype
    assert jnp.allclose(out, ref, atol=1e-6), "mismatch with reference"

    print("KERNEL_OK")
</pallas_src>

<mosaic_0001>
module attributes {stable_mosaic.version = 11 : i64} {
  func.func @_relu_times4_kernel(%arg0: i32, %arg1: i32, %arg2: memref<1x256xf32, #tpu.memory_space<vmem>>, %arg3: memref<1x256xf32, #tpu.memory_space<vmem>>) attributes {dimension_semantics = [#tpu.dimension_semantics<parallel>, #tpu.dimension_semantics<parallel>], iteration_bounds = array<i64: 1, 1>, scalar_prefetch = 0 : i64, scratch_operands = 0 : i64, tpu.core_type = #tpu.core_type<tc>, window_params = [{transform_indices = @transform_0, window_bounds = array<i64: 1, 256>}, {transform_indices = @transform_1, window_bounds = array<i64: 1, 256>}]} {
    %c0 = arith.constant 0 : index
    %c0_0 = arith.constant 0 : index
    %0 = vector.load %arg2[%c0, %c0_0] : memref<1x256xf32, #tpu.memory_space<vmem>>, vector<1x256xf32>
    %cst = arith.constant 0.000000e+00 : f32
    %1 = vector.broadcast %cst : f32 to vector<1x256xf32>
    %2 = arith.maximumf %0, %1 : vector<1x256xf32>
    %cst_1 = arith.constant 4.000000e+00 : f32
    %3 = vector.broadcast %cst_1 : f32 to vector<1x256xf32>
    %4 = arith.mulf %2, %3 : vector<1x256xf32>
    %c0_2 = arith.constant 0 : index
    %c0_3 = arith.constant 0 : index
    %5 = vector.load %arg3[%c0_2, %c0_3] : memref<1x256xf32, #tpu.memory_space<vmem>>, vector<1x256xf32>
    tpu.vector_store %arg3[%c0_2, %c0_3], %4 {strides = array<i32>} : memref<1x256xf32, #tpu.memory_space<vmem>>, vector<1x256xf32>,
    return
  }
  func.func @transform_0(%arg0: i32, %arg1: i32) -> (i32, i32) {
    %c0_i32 = arith.constant 0 : i32
    return %arg0, %arg1 : i32, i32
  }
  func.func @transform_1(%arg0: i32, %arg1: i32) -> (i32, i32) {
    %c0_i32 = arith.constant 0 : i32
    return %arg0, %arg1 : i32, i32
  }
}

</mosaic_0001>

<bundles_post_ra>
// kernel: tpu_custom_call.1
= control target key start
LH: loop header
LB: loop body
LE: loop exit
PB: predicated region body
PF: predicated region fallthrough
CT: control target
= control target key end

     0   :  { %6 = vsyncpa [#allocation3], 0  ;;  %s130_s0 = inlined_call_operand.hbm [shape: f32[1,256], index: 0, kind: input, shape index: {}, may-alias: {0,1}]   ;;  %s131_s1 = inlined_call_operand.hbm [shape: f32[1,256], index: 1, kind: output, shape index: {}, may-alias: {0,1}]  }
   0x1   :  { %7 = vsyncpa [#allocation4], 0  ;;  %s94_s6 = smov [#allocation2]   ;;  %s46_s10 = scalar_lea.hbm %s130_s0, 32 }
   0x2   :  { %s14_s7 = sshll.u32 %s94_s6, 4  ;;  %p47_p0 = scmp.ne.s32.totalorder %s130_s0, %s46_s10  ;;  %s15_s7 = int_to_ptr.vmem [resolvable:$true] %s14_s7 }
   0x3   :  { %p50_p1 = scmp.lt.u32.totalorder %s46_s10, %s130_s0 }
   0x5   :  { %p52_p2 = pnand %p50_p1, %p47_p0 }
   0x7   :  { %55 = shalt.err (!%p52_p2)
}
   0x8   :  { %s56_s15 = scalar_lea.vmem %s15_s7, 32  ;;  %p61_p4 = scmp.lt.s32.totalorder %s15_s7, %s15_s7 }
   0x9   :  { %p57_p3 = scmp.ne.s32.totalorder %s15_s7, %s56_s15  ;;  %p62_p5 = scmp.lt.s32.totalorder %s56_s15, %s56_s15 }
   0xb   :  { %p63_p6 = por %p62_p5, %p61_p4 }
   0xd   :  { %p64_p7 = pnand %p63_p6, %p57_p3 }
   0xf   :  { %67 = shalt.err (!%p64_p7)
}
  0x10   :  { %17 = dma.hbm_to_vmem [thread:$0]  %s130_s0, 32, %s15_s7, [#allocation3]  }
  0x11   :  { %90 = dma.done.wait [#allocation3], 32  }
  0x12   :  { %91 = vsyncadd [#allocation3], 4294967264  ;;  %v24_v0 = vlaneseq  ;;  %v21_v1 = vld [vmem:[#allocation2] sm:$0x3]  ;;  %s95_s18 = smov [#allocation5]  }
  0x13   :  { %s35_s19 = sshll.u32 %s95_s18, 4  ;;  %v22_v2 = vmax.f32 %v21_v1, 0.0  ;;  %s36_s19 = int_to_ptr.vmem [resolvable:$true] %s35_s19 }
  0x14   :  { %vm26_vm0 = vcmp.lt.s32.totalorder %v24_v0, 256  ;;  %s68_s20 = scalar_lea.vmem %s36_s19, 32  ;;  %p73_p9 = scmp.lt.s32.totalorder %s36_s19, %s36_s19 }
  0x15   :  { %v23_v3 = vmul.f32 4.0, %v22_v2  ;;  %p69_p8 = scmp.ne.s32.totalorder %s36_s19, %s68_s20  ;;  %p74_p10 = scmp.lt.s32.totalorder %s68_s20, %s68_s20 }
  0x17   :  { %28 = vst.msk [vmem:[#allocation5] sm:$0x3] %vm26_vm0, %v23_v3  ;;  %p75_p11 = por %p74_p10, %p73_p9 }
  0x19   :  { %p76_p12 = pnand %p75_p11, %p69_p8 }
  0x1b   :  { %79 = shalt.err (!%p76_p12)
}
  0x1c   :  { %s80_s22 = scalar_lea.hbm %s131_s1, 32 }
  0x1d   :  { %p81_p13 = scmp.ne.s32.totalorder %s131_s1, %s80_s22  ;;  %p84_p0 = scmp.lt.u32.totalorder %s80_s22, %s131_s1 }
  0x1f   :  { %p86_p1 = pnand %p84_p0, %p81_p13 }
  0x21   :  { %89 = shalt.err (!%p86_p1)
}
  0x22   :  { %38 = dma.vmem_to_hbm [thread:$0]  %s36_s19, 32, %s131_s1, [#allocation4]  }
  0x23   :  { %92 = dma.done.wait [#allocation4], 32  }
  0x24   :  { %93 = vsyncadd [#allocation4], 4294967264 }
  0x25   :  { %42 = vsyncpa [#allocation3], 1 }
  0x26   :  { %43 = vsyncpa [#allocation4], 1 }

</bundles_post_ra>
